<compile_context>
chip_gen: v6e
topology: v6e:2x2x1
jax: 0.10.0
libtpu: 0.0.40
codegen_flags: <defaults>
</compile_context>

<pallas_src>
import jax
import jax.numpy as jnp
from jax.experimental import pallas as pl
from jax.experimental.pallas import tpu as pltpu


def _inverse_dynamics_kernel(h_ref, hn_ref, w1a_ref, w1b_ref, b1_ref,
                             w2_ref, b2_ref, w3_ref, b3_ref, o_ref):
    h = h_ref[...]
    hn = hn_ref[...]

    # Fused concat: cat([h, hn], 1) @ W1 == h @ W1[:D] + hn @ W1[D:]
    z1 = (jnp.dot(h, w1a_ref[...], preferred_element_type=jnp.float32)
          + jnp.dot(hn, w1b_ref[...], preferred_element_type=jnp.float32)
          + b1_ref[...])
    a1 = jnp.maximum(z1, 0.0)

    z2 = jnp.dot(a1, w2_ref[...], preferred_element_type=jnp.float32) + b2_ref[...]
    a2 = jnp.maximum(z2, 0.0)

    z3 = jnp.dot(a2, w3_ref[...], preferred_element_type=jnp.float32) + b3_ref[...]
    o_ref[...] = z3.astype(o_ref.dtype)


def inverse_dynamics_head(h, h_next, w1, b1, w2, b2, w3, b3, *, block_b=8):
    """Pallas equivalent of InverseDynamics.forward given encoder features.

    h, h_next : (B, D)  encoder outputs (encoder.out_dim == D)
    w1 : (2D, H), b1 : (H,)   -- first Linear (on concatenated features)
    w2 : (H, H),  b2 : (H,)   -- second Linear
    w3 : (H, A),  b3 : (A,)   -- output Linear (A == action_shape[0])
    """
    h = h.astype(jnp.float32)
    h_next = h_next.astype(jnp.float32)

    B, D = h.shape
    H = w1.shape[1]
    A = w3.shape[1]
    assert w1.shape[0] == 2 * D and h_next.shape == (B, D)

    # Split W1 so the concat never materializes in HBM.
    w1a = w1[:D].astype(jnp.float32)
    w1b = w1[D:].astype(jnp.float32)
    b1r = b1.reshape(1, H).astype(jnp.float32)
    w2f = w2.astype(jnp.float32)
    b2r = b2.reshape(1, H).astype(jnp.float32)
    w3f = w3.astype(jnp.float32)
    b3r = b3.reshape(1, A).astype(jnp.float32)

    # Pad the batch only on the ragged-tail path (fast path = no extra HBM pass).
    n_blocks = pl.cdiv(B, block_b)
    Bp = n_blocks * block_b
    if Bp != B:
        pad = Bp - B
        h = jnp.pad(h, ((0, pad), (0, 0)))
        h_next = jnp.pad(h_next, ((0, pad), (0, 0)))

    out = pl.pallas_call(
        _inverse_dynamics_kernel,
        out_shape=jax.ShapeDtypeStruct((Bp, A), jnp.float32),
        grid=(n_blocks,),
        in_specs=[
            pl.BlockSpec((block_b, D), lambda i: (i, 0)),  # h tile
            pl.BlockSpec((block_b, D), lambda i: (i, 0)),  # h_next tile
            pl.BlockSpec((D, H), lambda i: (0, 0)),        # W1 (top half)
            pl.BlockSpec((D, H), lambda i: (0, 0)),        # W1 (bottom half)
            pl.BlockSpec((1, H), lambda i: (0, 0)),        # b1
            pl.BlockSpec((H, H), lambda i: (0, 0)),        # W2
            pl.BlockSpec((1, H), lambda i: (0, 0)),        # b2
            pl.BlockSpec((H, A), lambda i: (0, 0)),        # W3
            pl.BlockSpec((1, A), lambda i: (0, 0)),        # b3
        ],
        out_specs=pl.BlockSpec((block_b, A), lambda i: (i, 0)),
        compiler_params=pltpu.CompilerParams(
            dimension_semantics=("parallel",)),  # batch tiles are independent
    )(h, h_next, w1a, w1b, b1r, w2f, b2r, w3f, b3r)

    return out[:B] if Bp != B else out


def _reference(h, h_next, w1, b1, w2, b2, w3, b3):
    joint = jnp.concatenate([h, h_next], axis=1)
    y = jnp.maximum(joint @ w1 + b1, 0.0)
    y = jnp.maximum(y @ w2 + b2, 0.0)
    return y @ w3 + b3


if __name__ == "__main__":
    key = jax.random.PRNGKey(0)
    B, D, H, A = 16, 32, 32, 6  # batch, encoder.out_dim, hidden_dim, action_shape[0]

    ks = jax.random.split(key, 8)
    # Encoder features (encoder itself is external to this module's spec).
    h = jax.random.normal(ks[0], (B, D), dtype=jnp.float32)
    h_next = jax.random.normal(ks[1], (B, D), dtype=jnp.float32)
    # MLP parameters (forward semantics are independent of the init scheme).
    w1 = jax.random.normal(ks[2], (2 * D, H), dtype=jnp.float32) / jnp.sqrt(2.0 * D)
    b1 = 0.1 * jax.random.normal(ks[3], (H,), dtype=jnp.float32)
    w2 = jax.random.normal(ks[4], (H, H), dtype=jnp.float32) / jnp.sqrt(1.0 * H)
    b2 = 0.1 * jax.random.normal(ks[5], (H,), dtype=jnp.float32)
    w3 = jax.random.normal(ks[6], (H, A), dtype=jnp.float32) / jnp.sqrt(1.0 * H)
    b3 = 0.1 * jax.random.normal(ks[7], (A,), dtype=jnp.float32)

    out = inverse_dynamics_head(h, h_next, w1, b1, w2, b2, w3, b3, block_b=8)
    out = jax.block_until_ready(out)

    ref = _reference(h, h_next, w1, b1, w2, b2, w3, b3)

    assert out.shape == (B, A) and out.dtype == jnp.float32
    assert jnp.allclose(out, ref, atol=2e-2, rtol=2e-2), (
        f"max abs err = {jnp.max(jnp.abs(out - ref))}")
    print("KERNEL_OK")
</pallas_src>

<mosaic_0001>
module attributes {stable_mosaic.version = 11 : i64} {
  func.func @_inverse_dynamics_kernel(%arg0: i32, %arg1: memref<8x32xf32, #tpu.memory_space<vmem>>, %arg2: memref<8x32xf32, #tpu.memory_space<vmem>>, %arg3: memref<32x32xf32, #tpu.memory_space<vmem>>, %arg4: memref<32x32xf32, #tpu.memory_space<vmem>>, %arg5: memref<1x32xf32, #tpu.memory_space<vmem>>, %arg6: memref<32x32xf32, #tpu.memory_space<vmem>>, %arg7: memref<1x32xf32, #tpu.memory_space<vmem>>, %arg8: memref<32x6xf32, #tpu.memory_space<vmem>>, %arg9: memref<1x6xf32, #tpu.memory_space<vmem>>, %arg10: memref<8x6xf32, #tpu.memory_space<vmem>>) attributes {dimension_semantics = [#tpu.dimension_semantics<parallel>], iteration_bounds = array<i64: 2>, scalar_prefetch = 0 : i64, scratch_operands = 0 : i64, tpu.core_type = #tpu.core_type<tc>, window_params = [{transform_indices = @transform_0, window_bounds = array<i64: 8, 32>}, {transform_indices = @transform_1, window_bounds = array<i64: 8, 32>}, {pipeline_mode = #tpu.pipeline_mode<synchronous>, transform_indices = @transform_2, window_bounds = array<i64: 32, 32>}, {pipeline_mode = #tpu.pipeline_mode<synchronous>, transform_indices = @transform_3, window_bounds = array<i64: 32, 32>}, {pipeline_mode = #tpu.pipeline_mode<synchronous>, transform_indices = @transform_4, window_bounds = array<i64: 1, 32>}, {pipeline_mode = #tpu.pipeline_mode<synchronous>, transform_indices = @transform_5, window_bounds = array<i64: 32, 32>}, {pipeline_mode = #tpu.pipeline_mode<synchronous>, transform_indices = @transform_6, window_bounds = array<i64: 1, 32>}, {pipeline_mode = #tpu.pipeline_mode<synchronous>, transform_indices = @transform_7, window_bounds = array<i64: 32, 6>}, {pipeline_mode = #tpu.pipeline_mode<synchronous>, transform_indices = @transform_8, window_bounds = array<i64: 1, 6>}, {transform_indices = @transform_9, window_bounds = array<i64: 8, 6>}]} {
    %c0 = arith.constant 0 : index
    %c0_0 = arith.constant 0 : index
    %0 = vector.load %arg1[%c0, %c0_0] : memref<8x32xf32, #tpu.memory_space<vmem>>, vector<8x32xf32>
    %c0_1 = arith.constant 0 : index
    %c0_2 = arith.constant 0 : index
    %1 = vector.load %arg2[%c0_1, %c0_2] : memref<8x32xf32, #tpu.memory_space<vmem>>, vector<8x32xf32>
    %c0_3 = arith.constant 0 : index
    %c0_4 = arith.constant 0 : index
    %2 = vector.load %arg3[%c0_3, %c0_4] : memref<32x32xf32, #tpu.memory_space<vmem>>, vector<32x32xf32>
    %cst = arith.constant dense<0.000000e+00> : vector<8x32xf32>
    %3 = tpu.matmul %0, %2, %cst {dimension_numbers = #tpu.dot_dimension_numbers<[1], [0], [0], [1], [0, 0, 1, 1], [], []>} : vector<8x32xf32>, vector<32x32xf32>, vector<8x32xf32> -> vector<8x32xf32>
    %c0_5 = arith.constant 0 : index
    %c0_6 = arith.constant 0 : index
    %4 = vector.load %arg4[%c0_5, %c0_6] : memref<32x32xf32, #tpu.memory_space<vmem>>, vector<32x32xf32>
    %cst_7 = arith.constant dense<0.000000e+00> : vector<8x32xf32>
    %5 = tpu.matmul %1, %4, %cst_7 {dimension_numbers = #tpu.dot_dimension_numbers<[1], [0], [0], [1], [0, 0, 1, 1], [], []>} : vector<8x32xf32>, vector<32x32xf32>, vector<8x32xf32> -> vector<8x32xf32>
    %6 = arith.addf %3, %5 : vector<8x32xf32>
    %c0_8 = arith.constant 0 : index
    %c0_9 = arith.constant 0 : index
    %7 = vector.load %arg5[%c0_8, %c0_9] : memref<1x32xf32, #tpu.memory_space<vmem>>, vector<1x32xf32>
    %8 = vector.broadcast %7 : vector<1x32xf32> to vector<8x32xf32>
    %9 = arith.addf %6, %8 : vector<8x32xf32>
    %cst_10 = arith.constant 0.000000e+00 : f32
    %10 = vector.broadcast %cst_10 : f32 to vector<8x32xf32>
    %11 = arith.maximumf %9, %10 : vector<8x32xf32>
    %c0_11 = arith.constant 0 : index
    %c0_12 = arith.constant 0 : index
    %12 = vector.load %arg6[%c0_11, %c0_12] : memref<32x32xf32, #tpu.memory_space<vmem>>, vector<32x32xf32>
    %cst_13 = arith.constant dense<0.000000e+00> : vector<8x32xf32>
    %13 = tpu.matmul %11, %12, %cst_13 {dimension_numbers = #tpu.dot_dimension_numbers<[1], [0], [0], [1], [0, 0, 1, 1], [], []>} : vector<8x32xf32>, vector<32x32xf32>, vector<8x32xf32> -> vector<8x32xf32>
    %c0_14 = arith.constant 0 : index
    %c0_15 = arith.constant 0 : index
    %14 = vector.load %arg7[%c0_14, %c0_15] : memref<1x32xf32, #tpu.memory_space<vmem>>, vector<1x32xf32>
    %15 = vector.broadcast %14 : vector<1x32xf32> to vector<8x32xf32>
    %16 = arith.addf %13, %15 : vector<8x32xf32>
    %cst_16 = arith.constant 0.000000e+00 : f32
    %17 = vector.broadcast %cst_16 : f32 to vector<8x32xf32>
    %18 = arith.maximumf %16, %17 : vector<8x32xf32>
    %c0_17 = arith.constant 0 : index
    %c0_18 = arith.constant 0 : index
    %19 = vector.load %arg8[%c0_17, %c0_18] : memref<32x6xf32, #tpu.memory_space<vmem>>, vector<32x6xf32>
    %cst_19 = arith.constant dense<0.000000e+00> : vector<8x6xf32>
    %20 = tpu.matmul %18, %19, %cst_19 {dimension_numbers = #tpu.dot_dimension_numbers<[1], [0], [0], [1], [0, 0, 1, 1], [], []>} : vector<8x32xf32>, vector<32x6xf32>, vector<8x6xf32> -> vector<8x6xf32>
    %c0_20 = arith.constant 0 : index
    %c0_21 = arith.constant 0 : index
    %21 = vector.load %arg9[%c0_20, %c0_21] : memref<1x6xf32, #tpu.memory_space<vmem>>, vector<1x6xf32>
    %22 = vector.broadcast %21 : vector<1x6xf32> to vector<8x6xf32>
    %23 = arith.addf %20, %22 : vector<8x6xf32>
    %c0_22 = arith.constant 0 : index
    %c0_23 = arith.constant 0 : index
    %24 = vector.load %arg10[%c0_22, %c0_23] : memref<8x6xf32, #tpu.memory_space<vmem>>, vector<8x6xf32>
    tpu.vector_store %arg10[%c0_22, %c0_23], %23 {strides = array<i32>} : memref<8x6xf32, #tpu.memory_space<vmem>>, vector<8x6xf32>,
    return
  }
  func.func @transform_0(%arg0: i32) -> (i32, i32) {
    %c0_i32 = arith.constant 0 : i32
    %c0_i32_0 = arith.constant 0 : i32
    return %arg0, %c0_i32 : i32, i32
  }
  func.func @transform_1(%arg0: i32) -> (i32, i32) {
    %c0_i32 = arith.constant 0 : i32
    %c0_i32_0 = arith.constant 0 : i32
    return %arg0, %c0_i32 : i32, i32
  }
  func.func @transform_2(%arg0: i32) -> (i32, i32) {
    %c0_i32 = arith.constant 0 : i32
    %c0_i32_0 = arith.constant 0 : i32
    %c0_i32_1 = arith.constant 0 : i32
    return %c0_i32, %c0_i32_0 : i32, i32
  }
  func.func @transform_3(%arg0: i32) -> (i32, i32) {
    %c0_i32 = arith.constant 0 : i32
    %c0_i32_0 = arith.constant 0 : i32
    %c0_i32_1 = arith.constant 0 : i32
    return %c0_i32, %c0_i32_0 : i32, i32
  }
  func.func @transform_4(%arg0: i32) -> (i32, i32) {
    %c0_i32 = arith.constant 0 : i32
    %c0_i32_0 = arith.constant 0 : i32
    %c0_i32_1 = arith.constant 0 : i32
    return %c0_i32, %c0_i32_0 : i32, i32
  }
  func.func @transform_5(%arg0: i32) -> (i32, i32) {
    %c0_i32 = arith.constant 0 : i32
    %c0_i32_0 = arith.constant 0 : i32
    %c0_i32_1 = arith.constant 0 : i32
    return %c0_i32, %c0_i32_0 : i32, i32
  }
  func.func @transform_6(%arg0: i32) -> (i32, i32) {
    %c0_i32 = arith.constant 0 : i32
    %c0_i32_0 = arith.constant 0 : i32
    %c0_i32_1 = arith.constant 0 : i32
    return %c0_i32, %c0_i32_0 : i32, i32
  }
  func.func @transform_7(%arg0: i32) -> (i32, i32) {
    %c0_i32 = arith.constant 0 : i32
    %c0_i32_0 = arith.constant 0 : i32
    %c0_i32_1 = arith.constant 0 : i32
    return %c0_i32, %c0_i32_0 : i32, i32
  }
  func.func @transform_8(%arg0: i32) -> (i32, i32) {
    %c0_i32 = arith.constant 0 : i32
    %c0_i32_0 = arith.constant 0 : i32
    %c0_i32_1 = arith.constant 0 : i32
    return %c0_i32, %c0_i32_0 : i32, i32
  }
  func.func @transform_9(%arg0: i32) -> (i32, i32) {
    %c0_i32 = arith.constant 0 : i32
    %c0_i32_0 = arith.constant 0 : i32
    return %arg0, %c0_i32 : i32, i32
  }
}

</mosaic_0001>

<bundles_post_ra>
// kernel: tpu_custom_call.1
= control target key start
LH: loop header
LB: loop body
LE: loop exit
PB: predicated region body
PF: predicated region fallthrough
CT: control target
= control target key end

     0   :  { %s1469_s0 = inlined_call_operand.hbm [shape: f32[16,32], index: 0, kind: input, shape index: {}]   ;;  %s1470_s1 = inlined_call_operand.hbm [shape: f32[16,32], index: 1, kind: input, shape index: {}]   ;;  %s1471_s2 = inlined_call_operand.vmem [shape: f32[32,32], index: 2, kind: input, shape index: {}]   ;;  %s1472_s3 = inlined_call_operand.hbm [shape: f32[32,32], index: 3, kind: input, shape index: {}]   ;;  %s1473_s4 = inlined_call_operand.vmem [shape: f32[1,32], index: 4, kind: input, shape index: {}]   ;;  %s1474_s5 = inlined_call_operand.hbm [shape: f32[32,32], index: 5, kind: input, shape index: {}]   ;;  %s1475_s6 = inlined_call_operand.vmem [shape: f32[1,32], index: 6, kind: input, shape index: {}]   ;;  %s1476_s7 = inlined_call_operand.vmem [shape: f32[32,6], index: 7, kind: input, shape index: {}]   ;;  %s1477_s8 = inlined_call_operand.vmem [shape: f32[1,6], index: 8, kind: input, shape index: {}]   ;;  %s1478_s9 = inlined_call_operand.vmem [shape: f32[16,6], index: 9, kind: output, shape index: {}]  }
   0x1   :  { %1482 = sst [smem:[#allocation14_spill]] %s1472_s3 }
   0x2   :  { %1483 = sst [smem:[#allocation15_spill]] %s1474_s5 }
   0x3   :  { %14 = vsyncpa [#allocation3], 0 }
   0x4   :  { %16 = vsyncpa [#allocation3 + $0x1], 0 }
   0x5   :  { %17 = vsyncpa [#allocation5], 0 }
   0x6   :  { %19 = vsyncpa [#allocation5 + $0x1], 0 }
   0x7   :  { %20 = vsyncpa [#allocation8], 0  ;;  %s1229_s30 = smov 0   ;;  %s1231_s10 = smov 0  }
   0x8   :  { %s1233_s11 = smov 0   ;;  %s1235_s12 = smov 0  }
   0x9 LB: > { %s1248_s13 = sadd.s32 4294967295, %s1169_s12   ;;  %p46_p0 = scmp.ne.s32.totalorder %s1161_s10, %s1157_s30  ;;  %s1169_s12 = sphi %s1235_s12, %s1501_s12   ;;  %s1165_s11 = sphi %s1233_s11, %s1500_s11   ;;  %s1161_s10 = sphi %s1231_s10, %s1499_s10   ;;  %s1157_s30 = sphi %s1229_s30, %s1498_s30  }
   0xa   : > { %p1479_p1 = scmp.eq.s32.totalorder %s1248_s13, 0  ;;  %p859_p2 = scmp.ge.s32.totalorder %s1169_s12, 1 }
   0xb   : > { %p256_p3 = scmp.lt.s32.totalorder %s1169_s12, 3  ;;  %s1171_s16 = smov [#allocation6]  }
   0xc   : > { %p1256_p4 = por %p1479_p1, %p46_p0  ;;  %s271_s17 = sshll.u32 %s1171_s16, 4  ;;  %s272_s17 = int_to_ptr.vmem [resolvable:$true] %s271_s17 }
   0xd   : > { %p1260_p5 = pnand %p859_p2, %p256_p3  ;;  %s1172_s19 = smov [#allocation7]  }
   0xe   : > { %s1484_s14 = scalar_select %p1256_p4, 1, 0 }
   0xf   : > { %s1485_s15 = scalar_select %p1260_p5, 1, 0 }
  0x10   : > { %p958_p6 = pneg %p1260_p5  ;;  %s287_s20 = sshll.u32 %s1172_s19, 4  ;;  %s288_s20 = int_to_ptr.vmem [resolvable:$true] %s287_s20 }
  0x11   : > { %s1026_s21 = scalar_lea.vmem %s272_s17, 512  ;;  %p1034_p12 = scmp.lt.s32.totalorder %s272_s17, %s272_s17 }
  0x12   : > { %p1268_p7 = pnand %p958_p6, %p1479_p1  ;;  %p1027_p9 = scmp.ne.s32.totalorder %s272_s17, %s1026_s21 }
  0x13   : > { %p1035_p13 = scmp.lt.s32.totalorder %s1026_s21, %s1026_s21 }
  0x14   : > { %p1017_p8 = pneg %p1268_p7 }
  0x15   : > { %p1036_p0 = por %p1035_p13, %p1034_p12 }
  0x16   : > { %p1029_p10 = pnand %p1027_p9, %p1017_p8 }
  0x18   : > { %p1030_p11 = pneg %p1029_p10 }
  0x1a   : > { %p1037_p2 = pnand %p1036_p0, %p1030_p11 }
  0x1c   : > { %1040 = shalt.err (!%p1037_p2)
}
  0x1d   : > { %s1173_s22 = smov 128   ;;  %s1174_s23 = smov 8  }
  0x1e   : > { %s1487_s3 = sld [smem:[#allocation14_spill]]  ;;  %s1052_s26 = scalar_lea.vmem %s288_s20, 512 }
  0x1f   : > { %p1053_p3 = scmp.ne.s32.totalorder %s288_s20, %s1052_s26  ;;  %p1060_p10 = scmp.lt.s32.totalorder %s288_s20, %s288_s20 }
  0x20   : > { %p1061_p1 = scmp.lt.s32.totalorder %s1052_s26, %s1052_s26 }
  0x21   : > { %p1055_p6 = pnand %p1053_p3, %p1017_p8 }
  0x22   : > { %p1062_p12 = por %p1061_p1, %p1060_p10 }
  0x23   : > { %p1056_p9 = pneg %p1055_p6 }
  0x24   : > { %961 = dma.hbm_to_vmem [thread:$0]  (!%p1268_p7), %s1487_s3, 512, %s272_s17, [#allocation5], %s1173_s22, %s1173_s22, %s1174_s23  }
  0x25   : > { %p1063_p11 = pnand %p1062_p12, %p1056_p9 }
  0x27   : > { %1066 = shalt.err (!%p1063_p11)
}
  0x28   : > { %s1488_s5 = sld [smem:[#allocation15_spill]]  ;;  %s1291_s29 = sadd.s32 1, %s1169_s12  }
  0x29   : > { %s33_s30 = sadd.s32 1, %s1165_s11  ;;  %s30_s16 = ssub.s32 %s1169_s12, %s1291_s29 }
  0x2a   : > { %p40_p1 = scmp.ne.s32.totalorder %s1165_s11, %s1161_s10  ;;  %p31_p8 = scmp.eq.s32.totalorder %s30_s16, 0 }
  0x2b   : > { %p41_p13 = scmp.eq.s32.totalorder %s1169_s12, 0  ;;  %p974_p0 = scmp.lt.s32.totalorder %s1169_s12, 2 }
  0x2c   : > { %s310_s17 = sand.u32 1, %s1165_s11   ;;  %s864_s21 = sshll.u32 %s1169_s12, 7 }
  0x2d   : > { %s1302_s18 = scalar_select %p31_p8, %s1165_s11, %s33_s30  }
  0x2e   : > { %964 = dma.hbm_to_vmem [thread:$0]  (!%p1268_p7), %s1488_s5, 512, %s288_s20, [#allocation8], %s1173_s22, %s1173_s22, %s1174_s23  }
  0x2f   : > { %1489 = sst [smem:[#allocation13_spill]] %s1302_s18  ;;  %p42_p2 = por %p41_p13, %p40_p1 }
  0x30   : > { %s1304_s19 = sshll.u32 %s310_s17, 3  ;;  %s1310_s20 = scalar_lea.hbm %s1469_s0, %s864_s21 }
  0x31   : > { %s314_s22 = scalar_lea.vmem [#allocation2], %s1304_s19  ;;  %p1313_p7 = pnand %p974_p0, %p42_p2 }
  0x32   : > { %s321_s23 = sshll.u32 %s314_s22, 4  ;;  %s1320_s30 = scalar_lea.hbm %s1470_s1, %s864_s21  ;;  %s322_s23 = int_to_ptr.vmem [resolvable:$true] %s321_s23 }
  0x33   : > { %s311_s16 = scalar_lea.sflag [#allocation3], %s310_s17  ;;  %s1067_s24 = scalar_lea.hbm %s1310_s20, 128 }
  0x34   : > { %p1068_p3 = scmp.ne.s32.totalorder %s1310_s20, %s1067_s24  ;;  %p1069_p6 = pneg %p1313_p7 }
  0x35   : > { %s1072_s3 = scalar_lea.hbm %s1469_s0, 256  ;;  %p1073_p12 = scmp.lt.s32.totalorder %s1310_s20, %s1469_s0 }
  0x36   : > { %p1070_p9 = pnand %p1069_p6, %p1068_p3  ;;  %p1074_p11 = scmp.lt.s32.totalorder %s1072_s3, %s1067_s24 }
  0x38   : > { %p1071_p10 = pneg %p1070_p9  ;;  %p1075_p1 = por %p1074_p11, %p1073_p12 }
  0x3a   : > { %p1076_p8 = pnand %p1075_p1, %p1071_p10 }
  0x3c   : > { %1079 = shalt.err (!%p1076_p8)
}
  0x3d   : > { %s1080_s17 = scalar_lea.vmem %s322_s23, 128  ;;  %s1175_s21 = smov [#allocation2]  }
  0x3e   : > { %p1081_p13 = scmp.ne.s32.totalorder %s322_s23, %s1080_s17  ;;  %s1085_s27 = sshll.u32 %s1175_s21, 4  ;;  %s1086_s27 = int_to_ptr.vmem [resolvable:$false] %s1085_s27 }
  0x3f   : > { %s1087_s28 = scalar_lea.vmem %s1086_s27, 256  ;;  %p1088_p3 = scmp.lt.s32.totalorder %s322_s23, %s1086_s27 }
  0x40   : > { %p1083_p0 = pnand %p1081_p13, %p1069_p6  ;;  %p1089_p9 = scmp.lt.s32.totalorder %s1087_s28, %s1080_s17 }
  0x42   : > { %p1084_p2 = pneg %p1083_p0  ;;  %p1090_p4 = por %p1089_p9, %p1088_p3 }
  0x44   : > { %p1091_p5 = pnand %p1090_p4, %p1084_p2 }
  0x46   : > { %1094 = shalt.err (!%p1091_p5)
}
  0x47   : > { %968 = dma.hbm_to_vmem [thread:$0]  (!%p1313_p7), %s1310_s20, 128, %s322_s23, %s311_s16  }
  0x48   : > { %s328_s3 = sand.u32 1, %s1169_s12   ;;  %s332_s5 = scalar_lea.vmem [#allocation4], %s1304_s19 }
  0x49   : > { %s339_s18 = sshll.u32 %s332_s5, 4  ;;  %s329_s24 = scalar_lea.sflag [#allocation5], %s328_s3  ;;  %s340_s18 = int_to_ptr.vmem [resolvable:$true] %s339_s18 }
  0x4a   : > { %s1095_s25 = scalar_lea.hbm %s1320_s30, 128  ;;  %s1100_s21 = scalar_lea.hbm %s1470_s1, 256 }
  0x4b   : > { %p1096_p10 = scmp.ne.s32.totalorder %s1320_s30, %s1095_s25  ;;  %p1101_p12 = scmp.lt.s32.totalorder %s1320_s30, %s1470_s1 }
  0x4c   : > { %p1102_p11 = scmp.lt.s32.totalorder %s1100_s21, %s1095_s25 }
  0x4d   : > { %p1098_p4 = pnand %p1096_p10, %p1069_p6 }
  0x4e   : > { %p1103_p1 = por %p1102_p11, %p1101_p12 }
  0x4f   : > { %p1099_p5 = pneg %p1098_p4 }
  0x51   : > { %p1104_p8 = pnand %p1103_p1, %p1099_p5 }
  0x53   : > { %1107 = shalt.err (!%p1104_p8)
}
  0x54   : > { %s1108_s12 = scalar_lea.vmem %s340_s18, 128  ;;  %s1176_s19 = smov [#allocation4]  }
  0x55   : > { %p1109_p13 = scmp.ne.s32.totalorder %s340_s18, %s1108_s12  ;;  %s1113_s20 = sshll.u32 %s1176_s19, 4  ;;  %s1114_s20 = int_to_ptr.vmem [resolvable:$false] %s1113_s20 }
  0x56   : > { %s1115_s23 = scalar_lea.vmem %s1114_s20, 256  ;;  %p1116_p3 = scmp.lt.s32.totalorder %s340_s18, %s1114_s20 }
  0x57   : > { %p1111_p0 = pnand %p1109_p13, %p1069_p6  ;;  %p1117_p9 = scmp.lt.s32.totalorder %s1115_s23, %s1108_s12 }
  0x59   : > { %p1112_p2 = pneg %p1111_p0  ;;  %p1118_p10 = por %p1117_p9, %p1116_p3 }
  0x5b   : > { %p1119_p4 = pnand %p1118_p10, %p1112_p2 }
  0x5d   : > { %1122 = shalt.err (!%p1119_p4)
}
  0x5e   : > { %971 = dma.hbm_to_vmem [thread:$0]  (!%p1313_p7), %s1320_s30, 128, %s340_s18, %s329_s24  }
  0x5f   : > { %p1491_p5 = scmp.ne.s32.totalorder %s1485_s15, 0 }
  0x60   : > { %s350_s16 = sand.u32 (!%p1491_p5), 1, %s1161_s10   ;;  %p1492_p6 = scmp.ne.s32.totalorder (!%p1491_p5), %s1484_s14, 0 }
  0x61   : > { %348 = sbr.rel (%p1491_p5) target bundleno = 714 (0x2ca), region = 56  ;;  %s1365_s3 = sshll.u32 (!%p1491_p5), %s350_s16, 3 }
  0x62   : > { %s351_s5 = scalar_lea.sflag (!%p1491_p5), [#allocation3], %s350_s16  ;;  %s354_s25 = scalar_lea.vmem (!%p1491_p5), [#allocation2], %s1365_s3 }
  0x66   : > { %1140 = dma.done.wait (%p1492_p6), %s351_s5, 128  }
  0x67   : > { %1142 = vsyncadd (%p1492_p6), %s351_s5, 4294967168  ;;  %s359_s26 = sand.u32 1, %s1248_s13   ;;  %s363_s15 = scalar_lea.vmem [#allocation4], %s1365_s3 }
  0x68   : > { %s360_s30 = scalar_lea.sflag [#allocation5], %s359_s26 }
  0x69   : > { %1144 = dma.done.wait (%p1492_p6), %s360_s30, 128  }
  0x6a   : > { %1146 = vsyncadd (%p1492_p6), %s360_s30, 4294967168  ;;  %p1493_p7 = scmp.eq.s32.totalorder %s1248_s13, 0 }
  0x6c   : > { %1148 = dma.done.wait (%p1493_p7), [#allocation5], 512   ;;  %p1494_p12 = pmov %p1493_p7 }
  0x6d   : > { %p1495_p11 = pmov %p1493_p7 }
  0x6e   : > { %1150 = vsyncadd (%p1494_p12), [#allocation5], 4294966784 }
  0x6f   : > { %1152 = dma.done.wait (%p1495_p11), [#allocation8], 512   ;;  %p1496_p1 = pmov %p1493_p7 }
  0x70   : > { %v1177_v0 = vmov 0.0   ;;  %vm1178_vm0 = vmmov 0   ;;  %v423_v1 = vld [vmem:[#allocation6 + $0x18] sm:$0xff]  ;;  %v422_v3 = vld [vmem:[#allocation6 + $0x10] sm:$0xff]  ;;  %v421_v5 = vld [vmem:[#allocation6 + $0x8] sm:$0xff]  ;;  %vm424_vm1 = vcmask 261120  }
  0x71   : > { %1154 = vsyncadd (%p1496_p1), [#allocation8], 4294966784  ;;  %902 = vmatprep.subr.mxu0 %v1177_v0  ;;  %913 = vmatprep.subr.mxu1 %v1177_v0  ;;  %v419_v2 = vld [vmem:[%s1471_s2 + $0x18] sm:$0xff]  ;;  %v418_v4 = vld [vmem:[%s1471_s2 + $0x10] sm:$0xff]  ;;  %p410_p8 = scmp.lt.s32.totalorder %s1248_s13, 1  ;;  %vm749_vm2 = vcmask 48128  }
  0x72   : > { %910 = vmatprep.mubr.msk.f32.mxu0 %vm1178_vm0, %v1177_v0  ;;  %921 = vmatprep.mubr.msk.f32.mxu1 %vm1178_vm0, %v1177_v0  ;;  %v417_v6 = vld [vmem:[%s1471_s2 + $0x8] sm:$0xff]  ;;  %v420_v7 = vld [vmem:[#allocation6] sm:$0xff]  ;;  %v415_v9 = vld [vmem:[%s363_s15] sm:$0xff] }
  0x73   : > { %903 = vmatpush3.msra.mxu0 %v423_v1  ;;  %914 = vmatpush3.msra.mxu1 %v419_v2  ;;  %v416_v8 = vld [vmem:[%s1471_s2] sm:$0xff]  ;;  %v583_v11 = vld [vmem:[#allocation7 + $0x18] sm:$0xff]  ;;  %v582_v12 = vld [vmem:[#allocation7 + $0x10] sm:$0xff]  ;;  %s1503_s13 = smov (!%p410_p8, %s1248_s13), 1 }
  0x74   : > { %904 = vmatprep.subr.mxu0 %v1177_v0  ;;  %915 = vmatprep.subr.mxu1 %v1177_v0  ;;  %v414_v10 = vld [vmem:[%s354_s25] sm:$0xff]  ;;  %v668_v15 = vld [vmem:[%s1476_s7 + $0x18] sm:$0xff]  ;;  %v667_v24 = vld [vmem:[%s1476_s7 + $0x10] sm:$0xff]  ;;  %s872_s18 = sshll.u32 %s1503_s13, 3 }
  0x75   : > { %905 = vmatpush3.msra.mxu0 %v422_v3  ;;  %916 = vmatpush3.msra.mxu1 %v418_v4  ;;  %v581_v13 = vld [vmem:[#allocation7 + $0x8] sm:$0xff]  ;;  %v580_v14 = vld [vmem:[#allocation7] sm:$0xff]  ;;  %s413_s27 = scalar_lea.vmem %s1478_s9, %s872_s18 }
  0x76   : > { %906 = vmatprep.subr.mxu0 %v1177_v0  ;;  %917 = vmatprep.subr.mxu1 %v1177_v0  ;;  %v875_v18 = vld [vmem:[%s1473_s4] ss:$0 sm:$0xff]  ;;  %v666_v25 = vld [vmem:[%s1476_s7 + $0x8] sm:$0xff] }
  0x77   : > { %907 = vmatpush3.msra.mxu0 %v421_v5  ;;  %918 = vmatpush3.msra.mxu1 %v417_v6  ;;  %v665_v26 = vld [vmem:[%s1476_s7] sm:$0xff] }
  0x78   : > { %908 = vmatprep.subr.mxu0 %v1177_v0  ;;  %919 = vmatprep.subr.mxu1 %v1177_v0  ;;  %v876_v27 = vld [vmem:[%s1475_s6] ss:$0 sm:$0xff] }
  0x79   : > { %909 = vmatpush3.msra.mxu0 %v420_v7  ;;  %920 = vmatpush3.msra.mxu1 %v416_v8  ;;  %v878_v32 = vld [vmem:[%s1477_s8] ss:$0 sm:$0xff] }
  0x7a   : > { %911 = vmatmul.mubr.msk.f32.vlgmr.msra.gmra.mxu0 %vm424_vm1, %v415_v9  ;;  %922 = vmatmul.mubr.msk.f32.vlgmr.msra.gmra.mxu1 %vm424_vm1, %v414_v10 }
  0x7b   : > { %924 = vmatprep.subr.mxu0 %v1177_v0  ;;  %932 = vmatprep.mubr.msk.f32.mxu0 %vm1178_vm0, %v1177_v0 }
  0x7c   : > { %935 = vmatprep.subr.mxu1 %v1177_v0  ;;  %943 = vmatprep.mubr.msk.f32.mxu1 %vm1178_vm0, %v1177_v0 }
  0x7d   : > { %925 = vmatpush3.msra.mxu0 %v583_v11  ;;  %936 = vmatpush3.msra.mxu1 %v668_v15 }
  0x7e   : > { %926 = vmatprep.subr.mxu0 %v1177_v0  ;;  %937 = vmatprep.subr.mxu1 %v1177_v0 }
  0x7f   : > { %927 = vmatpush3.msra.mxu0 %v582_v12  ;;  %938 = vmatpush3.msra.mxu1 %v667_v24 }
  0x80   : > { %928 = vmatprep.subr.mxu0 %v1177_v0  ;;  %939 = vmatprep.subr.mxu1 %v1177_v0 }
  0x81   : > { %929 = vmatpush3.msra.mxu0 %v581_v13  ;;  %940 = vmatpush3.msra.mxu1 %v666_v25 }
  0x82   : > { %930 = vmatprep.subr.mxu0 %v1177_v0  ;;  %941 = vmatprep.subr.mxu1 %v1177_v0 }
  0x83   : > { %931 = vmatpush3.msra.mxu0 %v580_v14  ;;  %942 = vmatpush3.msra.mxu1 %v665_v26 }
 0x13a   : > { %v494_v16 = vpop.f32.mrf.mxu0  ;;  %v567_v17 = vpop.f32.mrf.mxu1 }
 0x13b   : > { %v568_v19 = vadd.f32 %v567_v17, %v494_v16 }
 0x13c   : > { %v912_v20 = vpop.f32.mrf.mxu0  ;;  %v923_v21 = vpop.f32.mrf.mxu1 }
 0x13d   : > { %v578_v22 = vadd.f32 %v875_v18, %v568_v19 }
 0x13f   : > { %v579_v23 = vmax.f32 %v578_v22, 0.0 }
 0x141   : > { %933 = vmatmul.mubr.msk.f32.vlgmr.msra.gmra.mxu0 %vm424_vm1, %v579_v23 }
 0x201   : > { %v660_v28 = vpop.f32.mrf.mxu0 }
 0x202   : > { %v661_v29 = vadd.f32 %v876_v27, %v660_v28 }
 0x203   : > { %v934_v30 = vpop.f32.mrf.mxu0 }
 0x204   : > { %v664_v31 = vmax.f32 %v661_v29, 0.0 }
 0x206   : > { %944 = vmatmul.mubr.msk.f32.vlgmr.msra.gmra.mxu1 %vm424_vm1, %v664_v31 }
 0x2c6   : > { %v745_v33 = vpop.f32.mrf.mxu1 }
 0x2c7   : > { %v746_v34 = vadd.f32 %v878_v32, %v745_v33 }
 0x2c8   : > { %v945_v35 = vpop.f32.mrf.mxu1 }
 0x2c9   : > { %750 = vst.msk [vmem:[%s413_s27] sm:$0xff] %vm749_vm2, %v746_v34 }
 0x2ca PF: > { %s1497_s28 = sld [smem:[#allocation13_spill]]  ;;  %p23_p13 = scmp.ge.s32.totalorder %s1291_s29, 4  }
 0x2cb   : > { %s1498_s30 = smov %s1161_s10  ;;  %s1499_s10 = smov %s1165_s11 }
 0x2cc   : > { %s1501_s12 = smov %s1291_s29  ;;  %25 = sbr.rel (!%p23_p13) target bundleno = 9 (0x9), region = 117 }
 0x2d0   : > { %s1500_s11 = smov %s1497_s28 }
 0x2d1   :  { %770 = vsyncpa [#allocation3], 1 }
 0x2d2   :  { %772 = vsyncpa [#allocation3 + $0x1], 1 }
 0x2d3   :  { %773 = vsyncpa [#allocation5], 1 }
 0x2d4   :  { %775 = vsyncpa [#allocation5 + $0x1], 1 }
 0x2d5   :  { %776 = vsyncpa [#allocation8], 1 }

</bundles_post_ra>
